<compile_context>
chip_gen: v7x
topology: tpu7x:2x2x1
jax: 0.10.0
libtpu: 0.0.40
codegen_flags: <defaults>
</compile_context>

<pallas_src>
import functools

import jax
import jax.numpy as jnp
from jax.experimental import pallas as pl
from jax.experimental.pallas import tpu as pltpu


# ------------------------------- kernel ------------------------------------ #

def _bi_encoder_kernel(inv_layers, use_bf16_tanh,
                       hsl_ref, hsr_ref,
                       w_att_ref, b_att_ref, u_att_ref,
                       w1_ref, w2_ref, w3_ref, bfc_ref,
                       out_ref,
                       acc_l, acc_r, z_l, z_r):
    """Grid = (batch_tiles, L).  L is the layer-mean reduction axis."""
    l = pl.program_id(1)
    n_layers = pl.num_programs(1)

    @pl.when(l == 0)
    def _():
        acc_l[...] = jnp.zeros_like(acc_l)
        acc_r[...] = jnp.zeros_like(acc_r)
        z_l[...] = jnp.zeros_like(z_l)
        z_r[...] = jnp.zeros_like(z_r)

    w_att = w_att_ref[...]                          # (H, U), already scaled by 1/L
    hl = hsl_ref[0]                                 # (Bblk, S, H), bf16 preferred
    hr = hsr_ref[0]

    # ---- layer-sum accumulation (ExtraRoberta mean, streamed per layer) ----
    acc_l[...] += hl.astype(jnp.float32)
    acc_r[...] += hr.astype(jnp.float32)

    # ---- attention projection streamed per layer (MXU hides under DMA) -----
    dn = (((2,), (0,)), ((), ()))
    z_l[...] += jax.lax.dot_general(hl.astype(w_att.dtype), w_att,
                                    dimension_numbers=dn,
                                    preferred_element_type=jnp.float32)
    z_r[...] += jax.lax.dot_general(hr.astype(w_att.dtype), w_att,
                                    dimension_numbers=dn,
                                    preferred_element_type=jnp.float32)

    # ---- pooling + head only once the full layer reduction is accumulated --
    @pl.when(l == n_layers - 1)
    def _():
        b_att = b_att_ref[...]                      # (1, U) f32
        u_att = u_att_ref[...]                      # (1, U) f32

        def pool(acc, z):
            # drp1: nn.Dropout in eval mode -> identity
            # e = tanh(mean_layers(hs) @ W_att + b) == tanh(z + b)
            # (1/L already folded into W_att host-side).
            arg = z + b_att                         # (Bblk, S, U) f32
            if use_bf16_tanh:                       # bf16 EUP path (v6e/v7x)
                e = jnp.tanh(arg.astype(jnp.bfloat16)).astype(jnp.float32)
            else:
                e = jnp.tanh(arg)
            # Lane-dense softmax over the sequence axis.
            scores = jnp.sum(e * u_att, axis=-1)    # (Bblk, S)
            scores = scores - jnp.max(scores, axis=-1, keepdims=True)
            p = jnp.exp(scores)
            denom = jnp.sum(p, axis=-1, keepdims=True)         # (Bblk, 1)
            a = p * pl.reciprocal(denom, approx=True)           # (Bblk, S)
            # Weighted pooling on VPU/XLU (no degenerate 1xS MXU matmul);
            # 1/L layer-mean scale applied to the small pooled vector.
            pooled = jnp.sum(a[:, :, None] * acc, axis=1) * inv_layers
            return pooled                            # (Bblk, H) f32

        xl = pool(acc_l[...], z_l[...])
        xr = pool(acc_r[...], z_r[...])

        # head: concat(xl, xr, ||xr - xl||_2) -> drp2 (identity) -> fc,
        # implemented concat-free.
        diff = xr - xl
        norm = jnp.sqrt(jnp.sum(diff * diff, axis=-1, keepdims=True))  # (Bblk,1)
        y = (jnp.dot(xl, w1_ref[...], preferred_element_type=jnp.float32)
             + jnp.dot(xr, w2_ref[...], preferred_element_type=jnp.float32)
             + norm * w3_ref[...]                    # (Bblk,1)*(1,OUT)
             + bfc_ref[...])                         # (1, OUT)
        out_ref[0] = y.astype(out_ref.dtype)


# ------------------------------- sizing ------------------------------------ #

def _vmem_capacity_bytes():
    """Physical VMEM per TensorCore; conservative fallback if query fails."""
    try:
        return int(pltpu.get_tpu_info().vmem_capacity_bytes)
    except Exception:
        return 64 * 1024 * 1024          # v7x-sized fallback (works everywhere)


def _pick_block_b(B, S, H, U, OUT, hs_itemsize, vmem_limit_bytes):
    """Largest batch tile whose VMEM footprint fits ~90% of vmem_limit_bytes.

    Footprint per batch row: left/right double-buffered layer slabs, two f32
    layer-sum accumulators, two f32 projection accumulators, and last-step
    temporaries (e, pooling product).  Any block_b is layout-legal because the
    output is shaped (nb, block_b, OUT); we only require block_b | B so no
    batch padding (and no extra HBM copy) is ever needed.
    """
    per_row = (2 * 2 * S * H * hs_itemsize   # L/R layer slabs, double-buffered
               + 2 * S * H * 4               # f32 layer-sum accumulators
               + 2 * S * U * 4               # f32 projection accumulators
               + S * U * 4 + S * H * 4)      # last-step temporaries
    fixed = (2 * (H * U * hs_itemsize + 2 * H * OUT * 4 + 4 * OUT * 4)
             + (4 << 20))                    # resident weights + slack
    budget = int(0.9 * vmem_limit_bytes) - fixed
    cand = max(1, budget // per_row)
    cand = min(cand, B)
    if B >= 16:
        # keep at least 2 batch tiles so the "parallel" axis can shard across
        # v7x's two TensorCores (harmless elsewhere).
        cand = min(cand, B // 2)
    for bb in range(int(cand), 0, -1):
        if B % bb == 0:
            return bb
    return 1


# ------------------------------- wrapper ------------------------------------ #

def bi_encoder_forward(hs_left, hs_right, params, *,
                       block_b=None, vmem_limit_bytes=None,
                       use_bf16_tanh=False):
    """Equivalent of BiEncoder.forward([inp_left, inp_right]) with
    concat_embeddings=True, eval mode (dropouts identity).  Inputs are the
    backbone hidden states (L, B, S, H); bf16 strongly preferred (kernel is
    HBM-bandwidth bound)."""
    L, B, S, H = hs_left.shape
    assert hs_right.shape == (L, B, S, H)
    U = params["w_att"].shape[1]
    OUT = params["w1"].shape[1]

    if vmem_limit_bytes is None:
        vmem_limit_bytes = int(0.75 * _vmem_capacity_bytes())
    if block_b is None:
        block_b = _pick_block_b(B, S, H, U, OUT,
                                jnp.dtype(hs_left.dtype).itemsize,
                                vmem_limit_bytes)
    assert 1 <= block_b <= B and B % block_b == 0, (B, block_b)
    nb = B // block_b

    # Fold the 1/L layer-mean scale into W_att host-side (tanh's argument is
    # linear in the layer sum), so the kernel never scales a (B,S,*) tensor.
    w_att = (params["w_att"].astype(jnp.float32) * (1.0 / L)
             ).astype(params["w_att"].dtype)

    kernel = functools.partial(_bi_encoder_kernel, 1.0 / L, bool(use_bf16_tanh))

    out = pl.pallas_call(
        kernel,
        out_shape=jax.ShapeDtypeStruct((nb, block_b, OUT), jnp.float32),
        grid_spec=pltpu.PrefetchScalarGridSpec(
            num_scalar_prefetch=0,
            grid=(nb, L),                              # reduction axis (L) last
            in_specs=[
                # one (layer, batch-tile) slab per step; S, H full => lane-dense
                pl.BlockSpec((1, block_b, S, H), lambda b, l: (l, b, 0, 0)),
                pl.BlockSpec((1, block_b, S, H), lambda b, l: (l, b, 0, 0)),
                # weights: constant block index -> DMA'd once, stay resident
                pl.BlockSpec((H, U), lambda b, l: (0, 0)),
                pl.BlockSpec((1, U), lambda b, l: (0, 0)),
                pl.BlockSpec((1, U), lambda b, l: (0, 0)),
                pl.BlockSpec((H, OUT), lambda b, l: (0, 0)),
                pl.BlockSpec((H, OUT), lambda b, l: (0, 0)),
                pl.BlockSpec((1, OUT), lambda b, l: (0, 0)),
                pl.BlockSpec((1, OUT), lambda b, l: (0, 0)),
            ],
            # (nb, block_b, OUT): last two dims equal the full array dims, so
            # any block_b (even <8 / non-multiple-of-8) is layout-legal.
            out_specs=pl.BlockSpec((1, block_b, OUT), lambda b, l: (b, 0, 0)),
            scratch_shapes=[
                pltpu.VMEM((block_b, S, H), jnp.float32),   # left layer-sum acc
                pltpu.VMEM((block_b, S, H), jnp.float32),   # right layer-sum acc
                pltpu.VMEM((block_b, S, U), jnp.float32),   # left proj acc
                pltpu.VMEM((block_b, S, U), jnp.float32),   # right proj acc
            ],
        ),
        compiler_params=pltpu.CompilerParams(
            dimension_semantics=("parallel", "arbitrary"),
            vmem_limit_bytes=int(vmem_limit_bytes)),
    )(hs_left, hs_right,
      w_att, params["b_att"], params["u_att"],
      params["w1"], params["w2"], params["w3"], params["b_fc"])

    return out.reshape(B, OUT)


# ------------------------------- reference ---------------------------------- #

def _ref_embedding(hs, w, b, u):
    emb = jnp.mean(hs, axis=0)
    e = jnp.tanh(jnp.einsum("bsh,hu->bsu", emb, w) + b)
    scores = jnp.sum(e * u[None, :, :], axis=-1, keepdims=True)
    a = jax.nn.softmax(scores, axis=1)
    return jnp.sum(a * emb, axis=1)


def _ref_forward(hs_left, hs_right, p):
    xl = _ref_embedding(hs_left, p["w_att"], p["b_att"], p["u_att"])
    xr = _ref_embedding(hs_right, p["w_att"], p["b_att"], p["u_att"])
    norm = jnp.linalg.norm(xr - xl, ord=2, axis=-1, keepdims=True)
    x = jnp.concatenate([xl, xr, norm], axis=-1)
    w_full = jnp.concatenate([p["w1"], p["w2"], p["w3"]], axis=0)   # (2H+1, OUT)
    return x @ w_full + p["b_fc"]


# --------------------------------- main -------------------------------------- #

if __name__ == "__main__":
    # Small shapes consistent with the module (H plays the role of 768).
    L, B, S, H = 4, 2, 8, 32       # layers, batch, seq, hidden
    U = H                           # PoolingStrategy units == hidden_dim
    OUT = 128                       # num_label is None -> fc outputs 128

    key = jax.random.PRNGKey(0)
    k_hsl, k_hsr, k_w, k_b, k_u, k_fc = jax.random.split(key, 6)

    # Hidden states + W_att in bf16 (kernel is HBM-bandwidth-bound);
    # pooling/softmax/head math stays f32 inside the kernel.
    hs_left = jax.random.normal(k_hsl, (L, B, S, H), dtype=jnp.float32).astype(jnp.bfloat16)
    hs_right = jax.random.normal(k_hsr, (L, B, S, H), dtype=jnp.float32).astype(jnp.bfloat16)

    w_att = (jax.random.normal(k_w, (H, U), dtype=jnp.float32) * 0.05).astype(jnp.bfloat16)
    b_att = jax.random.normal(k_b, (1, U), dtype=jnp.float32) * 0.05
    u_att = jax.random.normal(k_u, (1, U), dtype=jnp.float32) * 0.05

    # fc: Linear(2H+1, OUT), xavier_uniform weight, zero bias (stored as (in, out)).
    fan_in, fan_out = 2 * H + 1, OUT
    bound = float(jnp.sqrt(6.0 / (fan_in + fan_out)))
    w_fc = jax.random.uniform(k_fc, (fan_in, fan_out), dtype=jnp.float32,
                              minval=-bound, maxval=bound)
    params = {
        "w_att": w_att, "b_att": b_att, "u_att": u_att,
        "w1": w_fc[:H, :],            # weights for x_left features
        "w2": w_fc[H:2 * H, :],       # weights for x_right features
        "w3": w_fc[2 * H:, :],        # weight row for the L2-norm feature (1, OUT)
        "b_fc": jnp.zeros((1, OUT), dtype=jnp.float32),
    }

    out = bi_encoder_forward(hs_left, hs_right, params)
    out = jax.block_until_ready(out)

    ref_params = dict(params, w_att=params["w_att"].astype(jnp.float32))
    ref = _ref_forward(hs_left.astype(jnp.float32), hs_right.astype(jnp.float32),
                       ref_params)

    assert out.shape == (B, OUT), out.shape
    max_err = float(jnp.max(jnp.abs(out - ref)))
    assert jnp.allclose(out, ref, rtol=1e-2, atol=1e-2), max_err
    print("KERNEL_OK")
</pallas_src>

<mosaic_0001>
module attributes {stable_mosaic.version = 11 : i64} {
  func.func @_bi_encoder_kernel(%arg0: i32, %arg1: i32, %arg2: memref<1x2x8x32xbf16, #tpu.memory_space<vmem>>, %arg3: memref<1x2x8x32xbf16, #tpu.memory_space<vmem>>, %arg4: memref<32x32xbf16, #tpu.memory_space<vmem>>, %arg5: memref<1x32xf32, #tpu.memory_space<vmem>>, %arg6: memref<1x32xf32, #tpu.memory_space<vmem>>, %arg7: memref<32x128xf32, #tpu.memory_space<vmem>>, %arg8: memref<32x128xf32, #tpu.memory_space<vmem>>, %arg9: memref<1x128xf32, #tpu.memory_space<vmem>>, %arg10: memref<1x128xf32, #tpu.memory_space<vmem>>, %arg11: memref<1x2x128xf32, #tpu.memory_space<vmem>>, %arg12: memref<2x8x32xf32, #tpu.memory_space<vmem>>, %arg13: memref<2x8x32xf32, #tpu.memory_space<vmem>>, %arg14: memref<2x8x32xf32, #tpu.memory_space<vmem>>, %arg15: memref<2x8x32xf32, #tpu.memory_space<vmem>>) attributes {dimension_semantics = [#tpu.dimension_semantics<parallel>, #tpu.dimension_semantics<arbitrary>], iteration_bounds = array<i64: 1, 4>, scalar_prefetch = 0 : i64, scratch_operands = 4 : i64, tpu.core_type = #tpu.core_type<tc>, window_params = [{transform_indices = @transform_0, window_bounds = array<i64: 1, 2, 8, 32>}, {transform_indices = @transform_1, window_bounds = array<i64: 1, 2, 8, 32>}, {pipeline_mode = #tpu.pipeline_mode<synchronous>, transform_indices = @transform_2, window_bounds = array<i64: 32, 32>}, {pipeline_mode = #tpu.pipeline_mode<synchronous>, transform_indices = @transform_3, window_bounds = array<i64: 1, 32>}, {pipeline_mode = #tpu.pipeline_mode<synchronous>, transform_indices = @transform_4, window_bounds = array<i64: 1, 32>}, {pipeline_mode = #tpu.pipeline_mode<synchronous>, transform_indices = @transform_5, window_bounds = array<i64: 32, 128>}, {pipeline_mode = #tpu.pipeline_mode<synchronous>, transform_indices = @transform_6, window_bounds = array<i64: 32, 128>}, {pipeline_mode = #tpu.pipeline_mode<synchronous>, transform_indices = @transform_7, window_bounds = array<i64: 1, 128>}, {pipeline_mode = #tpu.pipeline_mode<synchronous>, transform_indices = @transform_8, window_bounds = array<i64: 1, 128>}, {transform_indices = @transform_9, window_bounds = array<i64: 1, 2, 128>}]} {
    %c0_i32 = arith.constant 0 : i32
    %0 = arith.cmpi eq, %arg1, %c0_i32 : i32
    %1 = arith.extui %0 : i1 to i32
    %c0_i32_0 = arith.constant 0 : i32
    %2 = arith.cmpi ne, %1, %c0_i32_0 : i32
    scf.if %2 {
      %cst_36 = arith.constant 0.000000e+00 : f32
      %27 = vector.broadcast %cst_36 : f32 to vector<2x8x32xf32>
      %c0_37 = arith.constant 0 : index
      %c0_38 = arith.constant 0 : index
      %c0_39 = arith.constant 0 : index
      %28 = vector.load %arg12[%c0_37, %c0_38, %c0_39] : memref<2x8x32xf32, #tpu.memory_space<vmem>>, vector<2x8x32xf32>
      tpu.vector_store %arg12[%c0_37, %c0_38, %c0_39], %27 {strides = array<i32>} : memref<2x8x32xf32, #tpu.memory_space<vmem>>, vector<2x8x32xf32>,
      %cst_40 = arith.constant 0.000000e+00 : f32
      %29 = vector.broadcast %cst_40 : f32 to vector<2x8x32xf32>
      %c0_41 = arith.constant 0 : index
      %c0_42 = arith.constant 0 : index
      %c0_43 = arith.constant 0 : index
      %30 = vector.load %arg13[%c0_41, %c0_42, %c0_43] : memref<2x8x32xf32, #tpu.memory_space<vmem>>, vector<2x8x32xf32>
      tpu.vector_store %arg13[%c0_41, %c0_42, %c0_43], %29 {strides = array<i32>} : memref<2x8x32xf32, #tpu.memory_space<vmem>>, vector<2x8x32xf32>,
      %cst_44 = arith.constant 0.000000e+00 : f32
      %31 = vector.broadcast %cst_44 : f32 to vector<2x8x32xf32>
      %c0_45 = arith.constant 0 : index
      %c0_46 = arith.constant 0 : index
      %c0_47 = arith.constant 0 : index
      %32 = vector.load %arg14[%c0_45, %c0_46, %c0_47] : memref<2x8x32xf32, #tpu.memory_space<vmem>>, vector<2x8x32xf32>
      tpu.vector_store %arg14[%c0_45, %c0_46, %c0_47], %31 {strides = array<i32>} : memref<2x8x32xf32, #tpu.memory_space<vmem>>, vector<2x8x32xf32>,
      %cst_48 = arith.constant 0.000000e+00 : f32
      %33 = vector.broadcast %cst_48 : f32 to vector<2x8x32xf32>
      %c0_49 = arith.constant 0 : index
      %c0_50 = arith.constant 0 : index
      %c0_51 = arith.constant 0 : index
      %34 = vector.load %arg15[%c0_49, %c0_50, %c0_51] : memref<2x8x32xf32, #tpu.memory_space<vmem>>, vector<2x8x32xf32>
      tpu.vector_store %arg15[%c0_49, %c0_50, %c0_51], %33 {strides = array<i32>} : memref<2x8x32xf32, #tpu.memory_space<vmem>>, vector<2x8x32xf32>,
    } else {
    }
    %c0 = arith.constant 0 : index
    %c0_1 = arith.constant 0 : index
    %3 = vector.load %arg4[%c0, %c0_1] : memref<32x32xbf16, #tpu.memory_space<vmem>>, vector<32x32xbf16>
    %c0_2 = arith.constant 0 : index
    %c0_3 = arith.constant 0 : index
    %c0_4 = arith.constant 0 : index
    %c0_5 = arith.constant 0 : index
    %4 = vector.load %arg2[%c0_2, %c0_3, %c0_4, %c0_5] : memref<1x2x8x32xbf16, #tpu.memory_space<vmem>>, vector<1x2x8x32xbf16>
    %5 = vector.shape_cast %4 : vector<1x2x8x32xbf16> to vector<2x8x32xbf16>
    %c0_6 = arith.constant 0 : index
    %c0_7 = arith.constant 0 : index
    %c0_8 = arith.constant 0 : index
    %c0_9 = arith.constant 0 : index
    %6 = vector.load %arg3[%c0_6, %c0_7, %c0_8, %c0_9] : memref<1x2x8x32xbf16, #tpu.memory_space<vmem>>, vector<1x2x8x32xbf16>
    %7 = vector.shape_cast %6 : vector<1x2x8x32xbf16> to vector<2x8x32xbf16>
    %c0_10 = arith.constant 0 : index
    %c0_11 = arith.constant 0 : index
    %c0_12 = arith.constant 0 : index
    %8 = vector.load %arg12[%c0_10, %c0_11, %c0_12] : memref<2x8x32xf32, #tpu.memory_space<vmem>>, vector<2x8x32xf32>
    %9 = arith.extf %5 : vector<2x8x32xbf16> to vector<2x8x32xf32>
    %10 = arith.addf %8, %9 : vector<2x8x32xf32>
    %c0_13 = arith.constant 0 : index
    %c0_14 = arith.constant 0 : index
    %c0_15 = arith.constant 0 : index
    %11 = vector.load %arg12[%c0_13, %c0_14, %c0_15] : memref<2x8x32xf32, #tpu.memory_space<vmem>>, vector<2x8x32xf32>
    tpu.vector_store %arg12[%c0_13, %c0_14, %c0_15], %10 {strides = array<i32>} : memref<2x8x32xf32, #tpu.memory_space<vmem>>, vector<2x8x32xf32>,
    %c0_16 = arith.constant 0 : index
    %c0_17 = arith.constant 0 : index
    %c0_18 = arith.constant 0 : index
    %12 = vector.load %arg13[%c0_16, %c0_17, %c0_18] : memref<2x8x32xf32, #tpu.memory_space<vmem>>, vector<2x8x32xf32>
    %13 = arith.extf %7 : vector<2x8x32xbf16> to vector<2x8x32xf32>
    %14 = arith.addf %12, %13 : vector<2x8x32xf32>
    %c0_19 = arith.constant 0 : index
    %c0_20 = arith.constant 0 : index
    %c0_21 = arith.constant 0 : index
    %15 = vector.load %arg13[%c0_19, %c0_20, %c0_21] : memref<2x8x32xf32, #tpu.memory_space<vmem>>, vector<2x8x32xf32>
    tpu.vector_store %arg13[%c0_19, %c0_20, %c0_21], %14 {strides = array<i32>} : memref<2x8x32xf32, #tpu.memory_space<vmem>>, vector<2x8x32xf32>,
    %c0_22 = arith.constant 0 : index
    %c0_23 = arith.constant 0 : index
    %c0_24 = arith.constant 0 : index
    %16 = vector.load %arg14[%c0_22, %c0_23, %c0_24] : memref<2x8x32xf32, #tpu.memory_space<vmem>>, vector<2x8x32xf32>
    %cst = arith.constant dense<0.000000e+00> : vector<2x8x32xf32>
    %17 = tpu.matmul %5, %3, %cst {dimension_numbers = #tpu.dot_dimension_numbers<[2], [0], [0, 1], [1], [0, 0, 0, 1, 1, 1], [], []>} : vector<2x8x32xbf16>, vector<32x32xbf16>, vector<2x8x32xf32> -> vector<2x8x32xf32>
    %18 = arith.addf %16, %17 : vector<2x8x32xf32>
    %c0_25 = arith.constant 0 : index
    %c0_26 = arith.constant 0 : index
    %c0_27 = arith.constant 0 : index
    %19 = vector.load %arg14[%c0_25, %c0_26, %c0_27] : memref<2x8x32xf32, #tpu.memory_space<vmem>>, vector<2x8x32xf32>
    tpu.vector_store %arg14[%c0_25, %c0_26, %c0_27], %18 {strides = array<i32>} : memref<2x8x32xf32, #tpu.memory_space<vmem>>, vector<2x8x32xf32>,
    %c0_28 = arith.constant 0 : index
    %c0_29 = arith.constant 0 : index
    %c0_30 = arith.constant 0 : index
    %20 = vector.load %arg15[%c0_28, %c0_29, %c0_30] : memref<2x8x32xf32, #tpu.memory_space<vmem>>, vector<2x8x32xf32>
    %cst_31 = arith.constant dense<0.000000e+00> : vector<2x8x32xf32>
    %21 = tpu.matmul %7, %3, %cst_31 {dimension_numbers = #tpu.dot_dimension_numbers<[2], [0], [0, 1], [1], [0, 0, 0, 1, 1, 1], [], []>} : vector<2x8x32xbf16>, vector<32x32xbf16>, vector<2x8x32xf32> -> vector<2x8x32xf32>
    %22 = arith.addf %20, %21 : vector<2x8x32xf32>
    %c0_32 = arith.constant 0 : index
    %c0_33 = arith.constant 0 : index
    %c0_34 = arith.constant 0 : index
    %23 = vector.load %arg15[%c0_32, %c0_33, %c0_34] : memref<2x8x32xf32, #tpu.memory_space<vmem>>, vector<2x8x32xf32>
    tpu.vector_store %arg15[%c0_32, %c0_33, %c0_34], %22 {strides = array<i32>} : memref<2x8x32xf32, #tpu.memory_space<vmem>>, vector<2x8x32xf32>,
    %c3_i32 = arith.constant 3 : i32
    %24 = arith.cmpi eq, %arg1, %c3_i32 : i32
    %25 = arith.extui %24 : i1 to i32
    %c0_i32_35 = arith.constant 0 : i32
    %26 = arith.cmpi ne, %25, %c0_i32_35 : i32
    scf.if %26 {
      %c0_36 = arith.constant 0 : index
      %c0_37 = arith.constant 0 : index
      %27 = vector.load %arg5[%c0_36, %c0_37] : memref<1x32xf32, #tpu.memory_space<vmem>>, vector<1x32xf32>
      %c0_38 = arith.constant 0 : index
      %c0_39 = arith.constant 0 : index
      %28 = vector.load %arg6[%c0_38, %c0_39] : memref<1x32xf32, #tpu.memory_space<vmem>>, vector<1x32xf32>
      %c0_40 = arith.constant 0 : index
      %c0_41 = arith.constant 0 : index
      %c0_42 = arith.constant 0 : index
      %29 = vector.load %arg12[%c0_40, %c0_41, %c0_42] : memref<2x8x32xf32, #tpu.memory_space<vmem>>, vector<2x8x32xf32>
      %c0_43 = arith.constant 0 : index
      %c0_44 = arith.constant 0 : index
      %c0_45 = arith.constant 0 : index
      %30 = vector.load %arg14[%c0_43, %c0_44, %c0_45] : memref<2x8x32xf32, #tpu.memory_space<vmem>>, vector<2x8x32xf32>
      %31 = vector.shape_cast %27 : vector<1x32xf32> to vector<1x1x32xf32>
      %32 = vector.broadcast %31 : vector<1x1x32xf32> to vector<2x8x32xf32>
      %33 = arith.addf %30, %32 : vector<2x8x32xf32>
      %34 = math.tanh %33 : vector<2x8x32xf32>
      %35 = vector.shape_cast %28 : vector<1x32xf32> to vector<1x1x32xf32>
      %36 = vector.broadcast %35 : vector<1x1x32xf32> to vector<2x8x32xf32>
      %37 = arith.mulf %34, %36 : vector<2x8x32xf32>
      %cst_46 = arith.constant dense<0.000000e+00> : vector<2x8xf32>
      %38 = vector.multi_reduction <add>, %37, %cst_46 [2] : vector<2x8x32xf32> to vector<2x8xf32>
      %cst_47 = arith.constant dense<0xFF800000> : vector<2xf32>
      %39 = vector.multi_reduction <maximumf>, %38, %cst_47 [1] : vector<2x8xf32> to vector<2xf32>
      %40 = vector.shape_cast %39 : vector<2xf32> to vector<2x1xf32>
      %41 = vector.broadcast %40 : vector<2x1xf32> to vector<2x8xf32>
      %42 = arith.subf %38, %41 : vector<2x8xf32>
      %43 = math.exp %42 : vector<2x8xf32>
      %cst_48 = arith.constant dense<0.000000e+00> : vector<2xf32>
      %44 = vector.multi_reduction <add>, %43, %cst_48 [1] : vector<2x8xf32> to vector<2xf32>
      %45 = vector.shape_cast %44 : vector<2xf32> to vector<2x1xf32>
      %46 = tpu.reciprocal %45 {approx = true} : vector<2x1xf32> -> vector<2x1xf32>
      %47 = vector.broadcast %46 : vector<2x1xf32> to vector<2x8xf32>
      %48 = arith.mulf %43, %47 : vector<2x8xf32>
      %49 = vector.shape_cast %48 : vector<2x8xf32> to vector<2x8x1xf32>
      %50 = vector.broadcast %49 : vector<2x8x1xf32> to vector<2x8x32xf32>
      %51 = arith.mulf %50, %29 : vector<2x8x32xf32>
      %cst_49 = arith.constant dense<0.000000e+00> : vector<2x32xf32>
      %52 = vector.multi_reduction <add>, %51, %cst_49 [1] : vector<2x8x32xf32> to vector<2x32xf32>
      %cst_50 = arith.constant 2.500000e-01 : f32
      %53 = vector.broadcast %cst_50 : f32 to vector<2x32xf32>
      %54 = arith.mulf %52, %53 : vector<2x32xf32>
      %c0_51 = arith.constant 0 : index
      %c0_52 = arith.constant 0 : index
      %c0_53 = arith.constant 0 : index
      %55 = vector.load %arg13[%c0_51, %c0_52, %c0_53] : memref<2x8x32xf32, #tpu.memory_space<vmem>>, vector<2x8x32xf32>
      %c0_54 = arith.constant 0 : index
      %c0_55 = arith.constant 0 : index
      %c0_56 = arith.constant 0 : index
      %56 = vector.load %arg15[%c0_54, %c0_55, %c0_56] : memref<2x8x32xf32, #tpu.memory_space<vmem>>, vector<2x8x32xf32>
      %57 = vector.shape_cast %27 : vector<1x32xf32> to vector<1x1x32xf32>
      %58 = vector.broadcast %57 : vector<1x1x32xf32> to vector<2x8x32xf32>
      %59 = arith.addf %56, %58 : vector<2x8x32xf32>
      %60 = math.tanh %59 : vector<2x8x32xf32>
      %61 = vector.shape_cast %28 : vector<1x32xf32> to vector<1x1x32xf32>
      %62 = vector.broadcast %61 : vector<1x1x32xf32> to vector<2x8x32xf32>
      %63 = arith.mulf %60, %62 : vector<2x8x32xf32>
      %cst_57 = arith.constant dense<0.000000e+00> : vector<2x8xf32>
      %64 = vector.multi_reduction <add>, %63, %cst_57 [2] : vector<2x8x32xf32> to vector<2x8xf32>
      %cst_58 = arith.constant dense<0xFF800000> : vector<2xf32>
      %65 = vector.multi_reduction <maximumf>, %64, %cst_58 [1] : vector<2x8xf32> to vector<2xf32>
      %66 = vector.shape_cast %65 : vector<2xf32> to vector<2x1xf32>
      %67 = vector.broadcast %66 : vector<2x1xf32> to vector<2x8xf32>
      %68 = arith.subf %64, %67 : vector<2x8xf32>
      %69 = math.exp %68 : vector<2x8xf32>
      %cst_59 = arith.constant dense<0.000000e+00> : vector<2xf32>
      %70 = vector.multi_reduction <add>, %69, %cst_59 [1] : vector<2x8xf32> to vector<2xf32>
      %71 = vector.shape_cast %70 : vector<2xf32> to vector<2x1xf32>
      %72 = tpu.reciprocal %71 {approx = true} : vector<2x1xf32> -> vector<2x1xf32>
      %73 = vector.broadcast %72 : vector<2x1xf32> to vector<2x8xf32>
      %74 = arith.mulf %69, %73 : vector<2x8xf32>
      %75 = vector.shape_cast %74 : vector<2x8xf32> to vector<2x8x1xf32>
      %76 = vector.broadcast %75 : vector<2x8x1xf32> to vector<2x8x32xf32>
      %77 = arith.mulf %76, %55 : vector<2x8x32xf32>
      %cst_60 = arith.constant dense<0.000000e+00> : vector<2x32xf32>
      %78 = vector.multi_reduction <add>, %77, %cst_60 [1] : vector<2x8x32xf32> to vector<2x32xf32>
      %cst_61 = arith.constant 2.500000e-01 : f32
      %79 = vector.broadcast %cst_61 : f32 to vector<2x32xf32>
      %80 = arith.mulf %78, %79 : vector<2x32xf32>
      %81 = arith.subf %80, %54 : vector<2x32xf32>
      %82 = arith.mulf %81, %81 : vector<2x32xf32>
      %cst_62 = arith.constant dense<0.000000e+00> : vector<2xf32>
      %83 = vector.multi_reduction <add>, %82, %cst_62 [1] : vector<2x32xf32> to vector<2xf32>
      %84 = vector.shape_cast %83 : vector<2xf32> to vector<2x1xf32>
      %85 = math.sqrt %84 : vector<2x1xf32>
      %c0_63 = arith.constant 0 : index
      %c0_64 = arith.constant 0 : index
      %86 = vector.load %arg7[%c0_63, %c0_64] : memref<32x128xf32, #tpu.memory_space<vmem>>, vector<32x128xf32>
      %cst_65 = arith.constant dense<0.000000e+00> : vector<2x128xf32>
      %87 = tpu.matmul %54, %86, %cst_65 {dimension_numbers = #tpu.dot_dimension_numbers<[1], [0], [0], [1], [0, 0, 1, 1], [], []>} : vector<2x32xf32>, vector<32x128xf32>, vector<2x128xf32> -> vector<2x128xf32>
      %c0_66 = arith.constant 0 : index
      %c0_67 = arith.constant 0 : index
      %88 = vector.load %arg8[%c0_66, %c0_67] : memref<32x128xf32, #tpu.memory_space<vmem>>, vector<32x128xf32>
      %cst_68 = arith.constant dense<0.000000e+00> : vector<2x128xf32>
      %89 = tpu.matmul %80, %88, %cst_68 {dimension_numbers = #tpu.dot_dimension_numbers<[1], [0], [0], [1], [0, 0, 1, 1], [], []>} : vector<2x32xf32>, vector<32x128xf32>, vector<2x128xf32> -> vector<2x128xf32>
      %90 = arith.addf %87, %89 : vector<2x128xf32>
      %c0_69 = arith.constant 0 : index
      %c0_70 = arith.constant 0 : index
      %91 = vector.load %arg9[%c0_69, %c0_70] : memref<1x128xf32, #tpu.memory_space<vmem>>, vector<1x128xf32>
      %92 = vector.broadcast %85 : vector<2x1xf32> to vector<2x128xf32>
      %93 = vector.broadcast %91 : vector<1x128xf32> to vector<2x128xf32>
      %94 = arith.mulf %92, %93 : vector<2x128xf32>
      %95 = arith.addf %90, %94 : vector<2x128xf32>
      %c0_71 = arith.constant 0 : index
      %c0_72 = arith.constant 0 : index
      %96 = vector.load %arg10[%c0_71, %c0_72] : memref<1x128xf32, #tpu.memory_space<vmem>>, vector<1x128xf32>
      %97 = vector.broadcast %96 : vector<1x128xf32> to vector<2x128xf32>
      %98 = arith.addf %95, %97 : vector<2x128xf32>
      %c0_73 = arith.constant 0 : index
      %c0_74 = arith.constant 0 : index
      %c0_75 = arith.constant 0 : index
      %99 = vector.load %arg11[%c0_73, %c0_74, %c0_75] : memref<1x2x128xf32, #tpu.memory_space<vmem>>, vector<1x2x128xf32>
      %100 = vector.shape_cast %99 : vector<1x2x128xf32> to vector<2x128xf32>
      %101 = vector.shape_cast %98 : vector<2x128xf32> to vector<1x2x128xf32>
      tpu.vector_store %arg11[%c0_73, %c0_74, %c0_75], %101 {strides = array<i32>} : memref<1x2x128xf32, #tpu.memory_space<vmem>>, vector<1x2x128xf32>,
    } else {
    }
    return
  }
  func.func @transform_0(%arg0: i32, %arg1: i32) -> (i32, i32, i32, i32) {
    %c0_i32 = arith.constant 0 : i32
    %c0_i32_0 = arith.constant 0 : i32
    %c0_i32_1 = arith.constant 0 : i32
    return %arg1, %arg0, %c0_i32, %c0_i32_0 : i32, i32, i32, i32
  }
  func.func @transform_1(%arg0: i32, %arg1: i32) -> (i32, i32, i32, i32) {
    %c0_i32 = arith.constant 0 : i32
    %c0_i32_0 = arith.constant 0 : i32
    %c0_i32_1 = arith.constant 0 : i32
    return %arg1, %arg0, %c0_i32, %c0_i32_0 : i32, i32, i32, i32
  }
  func.func @transform_2(%arg0: i32, %arg1: i32) -> (i32, i32) {
    %c0_i32 = arith.constant 0 : i32
    %c0_i32_0 = arith.constant 0 : i32
    %c0_i32_1 = arith.constant 0 : i32
    return %c0_i32, %c0_i32_0 : i32, i32
  }
  func.func @transform_3(%arg0: i32, %arg1: i32) -> (i32, i32) {
    %c0_i32 = arith.constant 0 : i32
    %c0_i32_0 = arith.constant 0 : i32
    %c0_i32_1 = arith.constant 0 : i32
    return %c0_i32, %c0_i32_0 : i32, i32
  }
  func.func @transform_4(%arg0: i32, %arg1: i32) -> (i32, i32) {
    %c0_i32 = arith.constant 0 : i32
    %c0_i32_0 = arith.constant 0 : i32
    %c0_i32_1 = arith.constant 0 : i32
    return %c0_i32, %c0_i32_0 : i32, i32
  }
  func.func @transform_5(%arg0: i32, %arg1: i32) -> (i32, i32) {
    %c0_i32 = arith.constant 0 : i32
    %c0_i32_0 = arith.constant 0 : i32
    %c0_i32_1 = arith.constant 0 : i32
    return %c0_i32, %c0_i32_0 : i32, i32
  }
  func.func @transform_6(%arg0: i32, %arg1: i32) -> (i32, i32) {
    %c0_i32 = arith.constant 0 : i32
    %c0_i32_0 = arith.constant 0 : i32
    %c0_i32_1 = arith.constant 0 : i32
    return %c0_i32, %c0_i32_0 : i32, i32
  }
  func.func @transform_7(%arg0: i32, %arg1: i32) -> (i32, i32) {
    %c0_i32 = arith.constant 0 : i32
    %c0_i32_0 = arith.constant 0 : i32
    %c0_i32_1 = arith.constant 0 : i32
    return %c0_i32, %c0_i32_0 : i32, i32
  }
  func.func @transform_8(%arg0: i32, %arg1: i32) -> (i32, i32) {
    %c0_i32 = arith.constant 0 : i32
    %c0_i32_0 = arith.constant 0 : i32
    %c0_i32_1 = arith.constant 0 : i32
    return %c0_i32, %c0_i32_0 : i32, i32
  }
  func.func @transform_9(%arg0: i32, %arg1: i32) -> (i32, i32, i32) {
    %c0_i32 = arith.constant 0 : i32
    %c0_i32_0 = arith.constant 0 : i32
    %c0_i32_1 = arith.constant 0 : i32
    return %arg0, %c0_i32, %c0_i32_0 : i32, i32, i32
  }
}

</mosaic_0001>

<bundles_post_ra>
// kernel: tpu_custom_call.1
= control target key start
LH: loop header
LB: loop body
LE: loop exit
PB: predicated region body
PF: predicated region fallthrough
CT: control target
= control target key end

     0   :  { %s2057_s0 = inlined_call_operand.hbm [shape: bf16[4,2,8,32], index: 0, kind: input, shape index: {}]   ;;  %s2058_s1 = inlined_call_operand.hbm [shape: bf16[4,2,8,32], index: 1, kind: input, shape index: {}]   ;;  %s2059_s2 = inlined_call_operand.hbm [shape: bf16[32,32], index: 2, kind: input, shape index: {}]   ;;  %s2060_s3 = inlined_call_operand.vmem [shape: f32[1,32], index: 3, kind: input, shape index: {}]   ;;  %s2061_s4 = inlined_call_operand.vmem [shape: f32[1,32], index: 4, kind: input, shape index: {}]   ;;  %s2062_s5 = inlined_call_operand.hbm [shape: f32[32,128], index: 5, kind: input, shape index: {}]   ;;  %s2063_s6 = inlined_call_operand.hbm [shape: f32[32,128], index: 6, kind: input, shape index: {}]   ;;  %s2064_s7 = inlined_call_operand.vmem [shape: f32[1,128], index: 7, kind: input, shape index: {}]   ;;  %s2065_s8 = inlined_call_operand.vmem [shape: f32[1,128], index: 8, kind: input, shape index: {}]   ;;  %s2066_s9 = inlined_call_operand.hbm [shape: f32[1,2,128], index: 9, kind: output, shape index: {}]  }
   0x1   :  { %2076 = sst [smem:[#allocation22_spill]] %s2057_s0 }
   0x2   :  { %2077 = sst [smem:[#allocation23_spill]] %s2059_s2 }
   0x3   :  { %2078 = sst [smem:[#allocation24_spill]] %s2062_s5 }
   0x4   :  { %2079 = sst [smem:[#allocation25_spill]] %s2063_s6 }
   0x5   :  { %2080 = sst [smem:[#allocation26_spill]] %s2065_s8 }
   0x6   :  { %2081 = sst [smem:[#allocation27_spill]] %s2066_s9 }
   0x7   :  { %14 = vsyncpa [#allocation7], 0 }
   0x8   :  { %16 = vsyncpa [#allocation7 + $0x1], 0 }
   0x9   :  { %17 = vsyncpa [#allocation10], 0 }
   0xa   :  { %19 = vsyncpa [#allocation10 + $0x1], 0 }
   0xb   :  { %20 = vsyncpa [#allocation13], 0 }
   0xc   :  { %21 = vsyncpa [#allocation8], 0  ;;  %s1722_s30 = smov 0   ;;  %s1724_s10 = smov 0  }
   0xd   :  { %s1726_s11 = smov 0   ;;  %s1728_s12 = smov 0  }
   0xe   :  { %s1730_s13 = smov 0   ;;  %s1732_s14 = smov 0  }
   0xf LB: > { %s1751_s15 = sadd.s32 4294967295, %s1653_s14   ;;  %p61_p0 = scmp.ne.s32.totalorder %s1637_s10, %s1633_s30  ;;  %s1653_s14 = sphi %s1732_s14, %s27_s14   ;;  %s1649_s13 = sphi %s1730_s13, %s2107_s13   ;;  %s1645_s12 = sphi %s1728_s12, %s2106_s12   ;;  %s1641_s11 = sphi %s1726_s11, %s2105_s11   ;;  %s1637_s10 = sphi %s1724_s10, %s2104_s10   ;;  %s1633_s30 = sphi %s1722_s30, %s2103_s30  }
  0x10   : > { %p2067_p1 = scmp.eq.s32.totalorder %s1751_s15, 0  ;;  %p1177_p2 = scmp.ge.s32.totalorder %s1653_s14, 1 }
  0x11   : > { %p273_p3 = scmp.lt.s32.totalorder %s1653_s14, 5  ;;  %s1655_s18 = smov [#allocation11]  }
  0x12   : > { %p1759_p4 = por %p2067_p1, %p61_p0  ;;  %s285_s19 = sshll.u32 %s1655_s18, 4  ;;  %s286_s19 = int_to_ptr.vmem [resolvable:$true] %s285_s19 }
  0x13   : > { %p1763_p5 = pnand %p1177_p2, %p273_p3  ;;  %s1656_s21 = smov [#allocation12]  }
  0x14   : > { %s2082_s16 = scalar_select %p1759_p4, 1, 0 }
  0x15   : > { %s2083_s17 = scalar_select %p1763_p5, 1, 0 }
  0x16   : > { %p1300_p6 = pneg %p1763_p5  ;;  %s304_s22 = sshll.u32 %s1656_s21, 4  ;;  %s1775_s22 = int_to_ptr.vmem [resolvable:$true] %s304_s22 }
  0x17   : > { %s2085_s2 = sld [smem:[#allocation23_spill]] }
  0x18   : > { %p1771_p7 = pnand %p1300_p6, %p2067_p1 }
  0x1a   : > { %p1785_p9 = pneg %p1771_p7 }
  0x1d   : > { %s1417_s25 = scalar_lea.hbm %s2085_s2, 256 }
  0x1e   : > { %p1418_p8 = scmp.ne.s32.totalorder %s2085_s2, %s1417_s25  ;;  %p1424_p12 = scmp.lt.u32.totalorder %s1417_s25, %s2085_s2 }
  0x20   : > { %p1420_p10 = pnand %p1785_p9, %p1418_p8 }
  0x22   : > { %p1421_p11 = pneg %p1420_p10 }
  0x24   : > { %p1426_p13 = pnand %p1424_p12, %p1421_p11 }
  0x26   : > { %1429 = shalt.err (!%p1426_p13)
}
  0x27   : > { %s1430_s18 = scalar_lea.vmem %s286_s19, 256  ;;  %p1438_p6 = scmp.lt.s32.totalorder %s286_s19, %s286_s19 }
  0x28   : > { %p1431_p0 = scmp.ne.s32.totalorder %s286_s19, %s1430_s18  ;;  %p1439_p1 = scmp.lt.s32.totalorder %s1430_s18, %s1430_s18 }
  0x2a   : > { %p1433_p2 = pnand %p1431_p0, %p1785_p9  ;;  %p1440_p4 = por %p1439_p1, %p1438_p6 }
  0x2c   : > { %p1434_p3 = pneg %p1433_p2 }
  0x2e   : > { %p1441_p5 = pnand %p1440_p4, %p1434_p3 }
  0x30   : > { %1444 = shalt.err (!%p1441_p5)
}
  0x31   : > { %s2071_s21 = smov 64   ;;  %s2073_s23 = smov 4  }
  0x32   : > { %1303 = dma.hbm_to_vmem [thread:$0]  (!%p1771_p7), %s2085_s2, 256, %s286_s19, [#allocation10], %s2071_s21, %s2071_s21, %s2073_s23  }
  0x33   : > { %s2087_s5 = sld [smem:[#allocation24_spill]] }
  0x39   : > { %s1445_s29 = scalar_lea.hbm %s2087_s5, 512 }
  0x3a   : > { %p1446_p1 = scmp.ne.s32.totalorder %s2087_s5, %s1445_s29  ;;  %p1452_p8 = scmp.lt.u32.totalorder %s1445_s29, %s2087_s5 }
  0x3c   : > { %p1448_p4 = pnand %p1446_p1, %p1785_p9 }
  0x3e   : > { %p1449_p5 = pneg %p1448_p4 }
  0x40   : > { %p1454_p10 = pnand %p1452_p8, %p1449_p5 }
  0x42   : > { %1457 = shalt.err (!%p1454_p10)
}
  0x43   : > { %s1458_s19 = scalar_lea.vmem %s1775_s22, 512  ;;  %p1466_p0 = scmp.lt.s32.totalorder %s1775_s22, %s1775_s22 }
  0x44   : > { %p1459_p11 = scmp.ne.s32.totalorder %s1775_s22, %s1458_s19  ;;  %p1467_p2 = scmp.lt.s32.totalorder %s1458_s19, %s1458_s19 }
  0x46   : > { %p1461_p12 = pnand %p1459_p11, %p1785_p9  ;;  %p1468_p3 = por %p1467_p2, %p1466_p0 }
  0x48   : > { %p1462_p13 = pneg %p1461_p12 }
  0x4a   : > { %p1469_p6 = pnand %p1468_p3, %p1462_p13 }
  0x4c   : > { %1472 = shalt.err (!%p1469_p6)
}
  0x4d   : > { %s1659_s24 = smov 128   ;;  %s1660_s8 = smov 8  }
  0x4e   : > { %1306 = dma.hbm_to_vmem [thread:$0]  (!%p1771_p7), %s2087_s5, 512, %s1775_s22, [#allocation13], %s1659_s24, %s1659_s24, %s1660_s8  }
  0x4f   : > { %s1661_s26 = smov [#allocation14]   ;;  %s2088_s6 = sld [smem:[#allocation25_spill]] }
  0x50   : > { %s317_s27 = sshll.u32 %s1661_s26, 4  ;;  %s318_s27 = int_to_ptr.vmem [resolvable:$true] %s317_s27 }
  0x55   : > { %s1473_s18 = scalar_lea.hbm %s2088_s6, 512 }
  0x56   : > { %p1474_p1 = scmp.ne.s32.totalorder %s2088_s6, %s1473_s18  ;;  %p1480_p8 = scmp.lt.u32.totalorder %s1473_s18, %s2088_s6 }
  0x58   : > { %p1476_p4 = pnand %p1474_p1, %p1785_p9 }
  0x5a   : > { %p1477_p5 = pneg %p1476_p4 }
  0x5c   : > { %p1482_p10 = pnand %p1480_p8, %p1477_p5 }
  0x5e   : > { %1485 = shalt.err (!%p1482_p10)
}
  0x5f   : > { %s1486_s22 = scalar_lea.vmem %s318_s27, 512  ;;  %p1494_p0 = scmp.lt.s32.totalorder %s318_s27, %s318_s27 }
  0x60   : > { %p1487_p11 = scmp.ne.s32.totalorder %s318_s27, %s1486_s22  ;;  %p1495_p2 = scmp.lt.s32.totalorder %s1486_s22, %s1486_s22 }
  0x62   : > { %p1489_p12 = pnand %p1487_p11, %p1785_p9  ;;  %p1496_p3 = por %p1495_p2, %p1494_p0 }
  0x64   : > { %p1490_p13 = pneg %p1489_p12 }
  0x66   : > { %p1497_p6 = pnand %p1496_p3, %p1490_p13 }
  0x68   : > { %1500 = shalt.err (!%p1497_p6)
}
  0x69   : > { %1309 = dma.hbm_to_vmem [thread:$0]  (!%p1771_p7), %s2088_s6, 512, %s318_s27, [#allocation13], %s1659_s24, %s1659_s24, %s1660_s8  }
  0x6a   : > { %s36_s2 = sadd.s32 1, %s1649_s13  ;;  %s48_s28 = sadd.s32 1, %s1641_s11 }
  0x6b   : > { %p37_p9 = scmp.ge.s32.totalorder %s36_s2, 4  ;;  %p55_p1 = scmp.ne.s32.totalorder %s1641_s11, %s1637_s10 }
  0x6c   : > { %p56_p4 = scmp.eq.s32.totalorder %s1653_s14, 0  ;;  %p1320_p8 = scmp.lt.s32.totalorder %s1653_s14, 4 }
  0x6d   : > { %s2109_s2 = smov (%p37_p9, %s36_s2), 0  ;;  %s337_s23 = sand.u32 1, %s1641_s11  }
  0x6e   : > { %2089 = sst [smem:[#allocation21_spill]] %s2109_s2  ;;  %p57_p5 = por %p56_p4, %p55_p1 }
  0x6f   : > { %s43_s20 = ssub.s32 %s1649_s13, %s2109_s2  ;;  %s1856_s25 = sshll.u32 %s337_s23, 3 }
  0x70   : > { %p46_p10 = scmp.eq.s32.totalorder %s43_s20, 0  ;;  %s1212_s26 = sshll.u32 %s1649_s13, 7 }
  0x71   : > { %s2090_s0 = sld [smem:[#allocation22_spill]]  ;;  %s341_s30 = scalar_lea.vmem [#allocation6], %s1856_s25 }
  0x72   : > { %s1860_s29 = scalar_select %p46_p10, %s1641_s11, %s48_s28  }
  0x73   : > { %s350_s18 = sshll.u32 %s341_s30, 4  ;;  %p1868_p7 = pnand %p1320_p8, %p57_p5  ;;  %s1872_s18 = int_to_ptr.vmem [resolvable:$true] %s350_s18 }
  0x74   : > { %s1877_s9 = scalar_lea.hbm %s2058_s1, %s1212_s26  ;;  %s1879_s28 = scalar_lea.sflag [#allocation7], %s337_s23 }
  0x75   : > { %p1503_p12 = pneg %p1868_p7 }
  0x77   : > { %s1865_s27 = scalar_lea.hbm %s2090_s0, %s1212_s26  ;;  %s1506_s30 = scalar_lea.hbm %s2090_s0, 512 }
  0x78   : > { %s1501_s20 = scalar_lea.hbm %s1865_s27, 128  ;;  %p1507_p2 = scmp.lt.u32.totalorder %s1865_s27, %s2090_s0 }
  0x79   : > { %p1502_p11 = scmp.ne.s32.totalorder %s1865_s27, %s1501_s20  ;;  %p1508_p3 = scmp.lt.u32.totalorder %s1506_s30, %s1501_s20 }
  0x7a   : > { %p1510_p9 = scmp.lt.u32.totalorder %s1501_s20, %s1865_s27 }
  0x7b   : > { %p1504_p13 = pnand %p1503_p12, %p1502_p11  ;;  %p1509_p6 = por %p1508_p3, %p1507_p2 }
  0x7d   : > { %p1505_p0 = pneg %p1504_p13  ;;  %p1511_p1 = por %p1510_p9, %p1509_p6 }
  0x7f   : > { %p1512_p4 = pnand %p1511_p1, %p1505_p0 }
  0x81   : > { %1515 = shalt.err (!%p1512_p4)
}
  0x82   : > { %s1516_s23 = scalar_lea.vmem %s1872_s18, 128  ;;  %s1662_s26 = smov [#allocation6]  }
  0x83   : > { %p1517_p5 = scmp.ne.s32.totalorder %s1872_s18, %s1516_s23  ;;  %s1521_s22 = sshll.u32 %s1662_s26, 4  ;;  %s1522_s22 = int_to_ptr.vmem [resolvable:$false] %s1521_s22 }
  0x84   : > { %s1523_s5 = scalar_lea.vmem %s1522_s22, 256  ;;  %p1524_p11 = scmp.lt.s32.totalorder %s1872_s18, %s1522_s22 }
  0x85   : > { %p1519_p8 = pnand %p1517_p5, %p1503_p12  ;;  %p1525_p13 = scmp.lt.s32.totalorder %s1523_s5, %s1516_s23 }
  0x87   : > { %p1520_p10 = pneg %p1519_p8  ;;  %p1526_p2 = por %p1525_p13, %p1524_p11 }
  0x89   : > { %p1527_p3 = pnand %p1526_p2, %p1520_p10 }
  0x8b   : > { %1530 = shalt.err (!%p1527_p3)
}
  0x8c   : > { %s2092_s6 = smov 4   ;;  %s2093_s21 = smov 64  }
  0x8d   : > { %1313 = dma.hbm_to_vmem [thread:$0]  (!%p1868_p7), %s1865_s27, 128, %s1872_s18, %s1879_s28, %s2093_s21, %s2093_s21, %s2092_s6  }
  0x8e   : > { %s364_s20 = scalar_lea.vmem [#allocation9], %s1856_s25  ;;  %s360_s8 = sand.u32 1, %s1653_s14  }
  0x8f   : > { %s373_s24 = sshll.u32 %s364_s20, 4  ;;  %s1914_s30 = scalar_lea.sflag [#allocation10], %s360_s8  ;;  %s1912_s24 = int_to_ptr.vmem [resolvable:$true] %s373_s24 }
  0x90   : > { %s1531_s23 = scalar_lea.hbm %s1877_s9, 128  ;;  %s1536_s5 = scalar_lea.hbm %s2058_s1, 512 }
  0x91   : > { %p1532_p0 = scmp.ne.s32.totalorder %s1877_s9, %s1531_s23  ;;  %p1537_p1 = scmp.lt.u32.totalorder %s1877_s9, %s2058_s1 }
  0x92   : > { %p1538_p4 = scmp.lt.u32.totalorder %s1536_s5, %s1531_s23  ;;  %p1540_p8 = scmp.lt.u32.totalorder %s1531_s23, %s1877_s9 }
  0x93   : > { %p1534_p6 = pnand %p1532_p0, %p1503_p12 }
  0x94   : > { %p1539_p5 = por %p1538_p4, %p1537_p1 }
  0x95   : > { %p1535_p9 = pneg %p1534_p6 }
  0x96   : > { %p1541_p10 = por %p1540_p8, %p1539_p5 }
  0x98   : > { %p1542_p11 = pnand %p1541_p10, %p1535_p9 }
  0x9a   : > { %1545 = shalt.err (!%p1542_p11)
}
  0x9b   : > { %s1546_s25 = scalar_lea.vmem %s1912_s24, 128  ;;  %s1663_s27 = smov [#allocation9]  }
  0x9c   : > { %p1547_p13 = scmp.ne.s32.totalorder %s1912_s24, %s1546_s25  ;;  %s1551_s18 = sshll.u32 %s1663_s27, 4  ;;  %s1552_s18 = int_to_ptr.vmem [resolvable:$false] %s1551_s18 }
  0x9d   : > { %s1553_s0 = scalar_lea.vmem %s1552_s18, 256  ;;  %p1554_p0 = scmp.lt.s32.totalorder %s1912_s24, %s1552_s18 }
  0x9e   : > { %p1549_p2 = pnand %p1547_p13, %p1503_p12  ;;  %p1555_p6 = scmp.lt.s32.totalorder %s1553_s0, %s1546_s25 }
  0xa0   : > { %p1550_p3 = pneg %p1549_p2  ;;  %p1556_p1 = por %p1555_p6, %p1554_p0 }
  0xa2   : > { %p1557_p4 = pnand %p1556_p1, %p1550_p3 }
  0xa4   : > { %1560 = shalt.err (!%p1557_p4)
}
  0xa5   : > { %1316 = dma.hbm_to_vmem [thread:$0]  (!%p1868_p7), %s1877_s9, 128, %s1912_s24, %s1914_s30, %s2093_s21, %s2093_s21, %s2092_s6  }
  0xa6   : > { %p2094_p12 = scmp.ne.s32.totalorder %s2083_s17, 0 }
  0xa7   : > { %s387_s2 = sand.u32 (!%p2094_p12), 1, %s1637_s10   ;;  %p2095_p9 = scmp.ne.s32.totalorder (!%p2094_p12), %s2082_s16, 0 }
  0xa8   : > { %385 = sbr.rel (%p2094_p12) target bundleno = 1450 (0x5aa), region = 56  ;;  %s1946_s28 = sshll.u32 (!%p2094_p12), %s387_s2, 3 }
  0xa9   : > { %s388_s20 = scalar_lea.sflag (!%p2094_p12), [#allocation7], %s387_s2  ;;  %s391_s8 = scalar_lea.vmem (!%p2094_p12), [#allocation6], %s1946_s28 }
  0xaf   : > { %1612 = dma.done.wait (%p2095_p9), %s388_s20, 128  }
  0xb0   : > { %1614 = vsyncadd (%p2095_p9), %s388_s20, 4294967168  ;;  %s396_s19 = sand.u32 1, %s1751_s15   ;;  %s400_s17 = scalar_lea.vmem [#allocation9], %s1946_s28 }
  0xb1   : > { %s397_s9 = scalar_lea.sflag [#allocation10], %s396_s19 }
  0xb2   : > { %1616 = dma.done.wait (%p2095_p9), %s397_s9, 128  }
  0xb3   : > { %1618 = vsyncadd (%p2095_p9), %s397_s9, 4294967168  ;;  %p2096_p7 = scmp.eq.s32.totalorder %s1751_s15, 0 }
  0xb5   : > { %1620 = dma.done.wait (%p2096_p7), [#allocation10], 256   ;;  %p2097_p5 = pmov %p2096_p7 }
  0xb7   : > { %1622 = vsyncadd (%p2097_p5), [#allocation10], 4294967040  ;;  %p2098_p8 = pmov %p2097_p5 }
  0xb8   : > { %p2099_p10 = pmov %p2097_p5 }
  0xb9   : > { %1624 = dma.done.wait (%p2098_p8), [#allocation13], 1024  }
  0xba   : > { %1626 = vsyncadd (%p2099_p10), [#allocation13], 4294966272  ;;  %p1194_p11 = scmp.ne.s32.totalorder %s1645_s12, 0 }
  0xbb   : > { %vm454_vm0 = vcmask (!%p1194_p11), 261120   ;;  %v1664_v0 = vmov (!%p1194_p11), 0.0  }
  0xbc   : > { %453 = sbr.rel (%p1194_p11) target bundleno = 195 (0xc3), region = 80  ;;  %455 = vst.msk [vmem:[#allocation2] sm:$0xff] (!%p1194_p11), %vm454_vm0, %v1664_v0  ;;  %456 = vst.msk [vmem:[#allocation2 + $0x8] sm:$0xff] (!%p1194_p11), %vm454_vm0, %v1664_v0 }
  0xbd   : > { %457 = vst.msk [vmem:[#allocation3] sm:$0xff] (!%p1194_p11), %vm454_vm0, %v1664_v0  ;;  %458 = vst.msk [vmem:[#allocation3 + $0x8] sm:$0xff] (!%p1194_p11), %vm454_vm0, %v1664_v0 }
  0xbe   : > { %459 = vst.msk [vmem:[#allocation4] sm:$0xff] (!%p1194_p11), %vm454_vm0, %v1664_v0  ;;  %460 = vst.msk [vmem:[#allocation4 + $0x8] sm:$0xff] (!%p1194_p11), %vm454_vm0, %v1664_v0 }
  0xbf   : > { %461 = vst.msk [vmem:[#allocation5] sm:$0xff] (!%p1194_p11), %vm454_vm0, %v1664_v0  ;;  %462 = vst.msk [vmem:[#allocation5 + $0x8] sm:$0xff] (!%p1194_p11), %vm454_vm0, %v1664_v0 }
  0xc3 PF: > { %v1389_v1 = vld [vmem:[#allocation11] sm:$0xff]   ;;  %v1665_v2 = vmov 0.0   ;;  %v1390_v3 = vld [vmem:[#allocation11 + $0x8] sm:$0xff]   ;;  %v469_v9 = vld [vmem:[%s400_s17] sm:$0xff]   ;;  %vm1666_vm1 = vmmov 0   ;;  %vm477_vm2 = vcmask 261120  }
  0xc4   : > { %1230 = vmatprep.subr.bf16.mxu0 %v1665_v2  ;;  %1238 = vmatprep.subr.bf16.mxu1 %v1665_v2  ;;  %v467_v4 = vld [vmem:[%s391_s8] sm:$0xff]   ;;  %v480_v10 = vld [vmem:[#allocation3] sm:$0xff]  ;;  %v481_v11 = vld [vmem:[#allocation3 + $0x8] sm:$0xff]  ;;  %v482_v12 = vunpack.c.l.bf16 %v469_v9  ;;  %v483_v13 = vunpack.c.h.bf16 %v469_v9  ;;  %p1201_p13 = scmp.ne.s32.totalorder %s1645_s12, 3 }
  0xc5   : > { %1231 = vmatpush3.bf16.msra.mxu0 %v1389_v1  ;;  %1239 = vmatpush3.bf16.msra.mxu1 %v1389_v1  ;;  %v471_v5 = vld [vmem:[#allocation2] sm:$0xff]  ;;  %v472_v6 = vld [vmem:[#allocation2 + $0x8] sm:$0xff]  ;;  %v473_v7 = vunpack.c.l.bf16 %v467_v4  ;;  %v474_v8 = vunpack.c.h.bf16 %v467_v4  ;;  %v646_v56 = vlaneseq (!%p1201_p13)  ;;  %vm656_vm3 = vcmask (!%p1201_p13), 1041409   ;;  %s2100_s22 = sld [smem:[#allocation26_spill]] (!%p1201_p13) }
  0xc6   : > { %1232 = vmatprep.subr.bf16.mxu0 %v1665_v2  ;;  %1240 = vmatprep.subr.bf16.mxu1 %v1665_v2  ;;  %v484_v16 = vadd.f32 %v482_v12, %v480_v10  ;;  %v485_v17 = vadd.f32 %v483_v13, %v481_v11  ;;  %v488_v18 = vld [vmem:[#allocation4] sm:$0xff]  ;;  %v555_v19 = vld [vmem:[#allocation5] sm:$0xff]  ;;  %v489_v22 = vld [vmem:[#allocation4 + $0x8] sm:$0xff]  ;;  %vm659_vm4 = vcmask (!%p1201_p13), 58368   ;;  %vm1669_vm5 = vmmov (!%p1201_p13), 0  }
  0xc7   : > { %1234 = vmatprep.mubr.msk.bf16.mxu0 %vm1666_vm1, %v1665_v2  ;;  %1242 = vmatprep.mubr.msk.bf16.mxu1 %vm1666_vm1, %v1665_v2  ;;  %v475_v14 = vadd.f32 %v473_v7, %v471_v5  ;;  %v476_v15 = vadd.f32 %v474_v8, %v472_v6  ;;  %v556_v23 = vld [vmem:[#allocation5 + $0x8] sm:$0xff]  ;;  %v1202_v34 = vld [vmem:[%s2060_s3] ss:$0 sm:$0xff] (!%p1201_p13)  ;;  %v647_v57 = vand.u32 (!%p1201_p13), 127, %v646_v56  ;;  %v649_v58 = vshrl.u32 (!%p1201_p13), %v646_v56, 7 }
  0xc8   : > { %486 = vst.msk [vmem:[#allocation3] sm:$0xff] %vm477_vm2, %v484_v16  ;;  %487 = vst.msk [vmem:[#allocation3 + $0x8] sm:$0xff] %vm477_vm2, %v485_v17  ;;  %v1203_v43 = vld [vmem:[%s2061_s4] ss:$0 sm:$0xff] (!%p1201_p13)  ;;  %v1667_v8 = vmov (!%p1201_p13), 0   ;;  %v1668_v56 = vmov (!%p1201_p13), 0.0|0.0  }
  0xc9   : > { %1233 = vmatpush3.bf16.msra.mxu0 %v1390_v3  ;;  %1241 = vmatpush3.bf16.msra.mxu1 %v1390_v3  ;;  %478 = vst.msk [vmem:[#allocation2] sm:$0xff] %vm477_vm2, %v475_v14  ;;  %479 = vst.msk [vmem:[#allocation2 + $0x8] sm:$0xff] %vm477_vm2, %v476_v15  ;;  %v650_v60 = vsub.s32 (!%p1201_p13), %v647_v57, %v649_v58  ;;  %v670_v10 = vsub.s32 (!%p1201_p13), 1, %v649_v58  ;;  %v875_v57 = vld [vmem:[#allocation12 + $0x10] sm:$0xff] (!%p1201_p13)  ;;  %vm862_vm6 = vcmask (!%p1201_p13), 254976  }
  0xca   : > { %1394 = vset.pattern.permute.xlu1 (!%p1201_p13), %v1667_v8  ;;  %1393 = vset.pattern.permute.xlu0 (!%p1201_p13), %v1667_v8 }
  0xcb   : > { %1274 = vmatprep.subr.bf16.mxu1 (!%p1201_p13), %v1668_v56  ;;  %1268 = vmatprep.subr.bf16.mxu0 (!%p1201_p13), %v1668_v56 }
  0xcc   : > { %1235 = vmatmul.mubr.msk.bf16.vlgmr.msra.gmra.mrb[0].mxu0 %vm477_vm2, %v467_v4  ;;  %1243 = vmatmul.mubr.msk.bf16.vlgmr.msra.gmra.mrb[0].mxu1 %vm477_vm2, %v469_v9  ;;  %v666_v9 = vsub.s32 (!%p1201_p13), 0, %v649_v58  ;;  %v876_v58 = vld [vmem:[#allocation12 + $0x18] sm:$0xff] (!%p1201_p13) }
 0x19e   : > { %613 = sbr.rel (%p1201_p13) target bundleno = 1419 (0x58b), region = 84 }
 0x19f   : > { %v544_v20 = vpop.f32.mrb[0].mxu0  ;;  %v599_v21 = vpop.f32.mrb[0].mxu1 }
 0x1a0   : > { %v551_v24 = vadd.f32 %v544_v20, %v488_v18  ;;  %v606_v25 = vadd.f32 %v599_v21, %v555_v19  ;;  %v1236_v26 = vpop.f32.mrb[1].mxu0  ;;  %v1244_v27 = vpop.f32.mrb[1].mxu1 }
 0x1a1   : > { %v547_v28 = vpop.f32.mrb[2].mxu0  ;;  %v602_v29 = vpop.f32.mrb[2].mxu1 }
 0x1a2   : > { %553 = vst.msk [vmem:[#allocation4] sm:$0xff] %vm477_vm2, %v551_v24  ;;  %608 = vst.msk [vmem:[#allocation5] sm:$0xff] %vm477_vm2, %v606_v25  ;;  %v552_v30 = vadd.f32 %v547_v28, %v489_v22  ;;  %v607_v31 = vadd.f32 %v602_v29, %v556_v23  ;;  %v1237_v32 = vpop.f32.mrb[3].mxu0  ;;  %v1245_v33 = vpop.f32.mrb[3].mxu1 }
 0x1a4   : > { %554 = vst.msk [vmem:[#allocation4 + $0x8] sm:$0xff] %vm477_vm2, %v552_v30  ;;  %609 = vst.msk [vmem:[#allocation5 + $0x8] sm:$0xff] %vm477_vm2, %v607_v31 }
 0x1a9   : > { %v745_v35 = vld [vmem:[#allocation5] sm:$0xff]  ;;  %v618_v37 = vld [vmem:[#allocation4] sm:$0xff] }
 0x1aa   : > { %v747_v36 = vadd.f32 %v1202_v34, %v745_v35  ;;  %v626_v40 = vadd.f32 %v1202_v34, %v618_v37 }
 0x1ab   : > { %v746_v38 = vld [vmem:[#allocation5 + $0x8] sm:$0xff]  ;;  %v619_v39 = vld [vmem:[#allocation4 + $0x8] sm:$0xff] }
 0x1ac   : > { %v748_v41 = vadd.f32 %v1202_v34, %v746_v38  ;;  %v627_v42 = vadd.f32 %v1202_v34, %v619_v39  ;;  %1395 = vtanh.f32 %v747_v36 }
 0x1ad   : > { %1397 = vtanh.f32 %v626_v40 }
 0x1ae   : > { %1399 = vtanh.f32 %v748_v41 }
 0x1af   : > { %1401 = vtanh.f32 %v627_v42 }
 0x1b6   : > { %v1396_v44 = vpop.eup %1395 }
 0x1b7   : > { %v1398_v45 = vpop.eup %1397  ;;  %v751_v46 = vmul.f32 %v1396_v44, %v1203_v43 }
 0x1b8   : > { %v1400_v47 = vpop.eup %1399  ;;  %v636_v48 = vmul.f32 %v1398_v45, %v1203_v43 }
 0x1b9   : > { %v1402_v49 = vpop.eup %1401  ;;  %v753_v50 = vsel %vm477_vm2, %v751_v46, 0.0  ;;  %v752_v51 = vmul.f32 %v1400_v47, %v1203_v43 }
 0x1ba   : > { %754 = vadd.xlane.f32.xlu1 %v753_v50  ;;  %v638_v52 = vsel %vm477_vm2, %v636_v48, 0.0  ;;  %v637_v53 = vmul.f32 %v1402_v49, %v1203_v43 }
 0x1bb   : > { %639 = vadd.xlane.f32.xlu0 %v638_v52  ;;  %v756_v54 = vsel %vm477_vm2, %v752_v51, 0.0  ;;  %v873_v52 = vld [vmem:[#allocation12] sm:$0xff] }
 0x1bc   : > { %v641_v55 = vsel %vm477_vm2, %v637_v53, 0.0  ;;  %v874_v53 = vld [vmem:[#allocation12 + $0x8] sm:$0xff] }
 0x1be   : > { %757 = vadd.xlane.f32.xlu1 %v756_v54  ;;  %v1275_v54 = vpack.c.bf16 %v874_v53, %v873_v52 }
 0x1bf   : > { %642 = vadd.xlane.f32.xlu0 %v641_v55 }
 0x1c0   : > { %1276 = vmatpush3.bf16.msra.mxu1 %v1275_v54 }
 0x1c1   : > { %1277 = vmatprep.subr.bf16.mxu1 %v1668_v56 }
 0x247   : > { %v755_v59 = vpop.xlane.xlu1 %754 }
 0x248   : > { %v640_v61 = vpop.xlane.xlu0 %639  ;;  %v764_v62 = vrot.slane %v755_v59, %v650_v60 }
 0x249   : > { %v651_v2 = vrot.slane %v640_v61, %v650_v60 }
 0x24b   : > { %v758_v63 = vpop.xlane.xlu1 %757 }
 0x24c   : > { %v768_v0 = vrot.slane %v758_v63, %v650_v60  ;;  %v643_v1 = vpop.xlane.xlu0 %642 }
 0x24d   : > { %v655_v3 = vrot.slane %v643_v1, %v650_v60 }
 0x24e   : > { %v769_v4 = vsel %vm656_vm3, %v768_v0, %v764_v62  ;;  %v878_v62 = vld [vmem:[#allocation14 + $0x8] sm:$0xff]  ;;  %v879_v0 = vld [vmem:[#allocation14 + $0x10] sm:$0xff] }
 0x24f   : > { %v771_v5 = vsel %vm659_vm4, %v769_v4, -inf  ;;  %v657_v6 = vsel %vm656_vm3, %v655_v3, %v651_v2  ;;  %v616_v3 = vld [vmem:[#allocation2] sm:$0xff]  ;;  %v617_v4 = vld [vmem:[#allocation2 + $0x8] sm:$0xff] }
 0x250   : > { %772 = vmax.xlane.f32.xlu1 %v771_v5  ;;  %v660_v7 = vsel %vm659_vm4, %v657_v6, -inf }
 0x251   : > { %661 = vmax.xlane.f32.xlu0 %v660_v7 }
 0x2dd   : > { %v773_v11 = vpop.xlane.xlu1 %772 }
 0x2de   : > { %v662_v12 = vpop.xlane.xlu0 %661  ;;  %v778_v13 = vrot.slane %v773_v11, %v666_v9  ;;  %v782_v18 = vrot.slane %v773_v11, %v670_v10 }
 0x2df   : > { %v667_v14 = vrot.slane %v662_v12, %v666_v9  ;;  %v671_v15 = vrot.slane %v662_v12, %v670_v10 }
 0x2e0   : > { %v785_v19 = vsub.f32 %v755_v59, %v778_v13  ;;  %v786_v22 = vsub.f32 %v758_v63, %v782_v18  ;;  %v1278_v59 = vpack.c.bf16 %v876_v58, %v875_v57 }
 0x2e1   : > { %v674_v16 = vsub.f32 %v640_v61, %v667_v14  ;;  %v675_v17 = vsub.f32 %v643_v1, %v671_v15  ;;  %v877_v61 = vld [vmem:[#allocation14] sm:$0xff]  ;;  %v880_v1 = vld [vmem:[#allocation14 + $0x18] sm:$0xff] }
 0x2e2   : > { %v787_v23 = vmul.f32 1.442695, %v785_v19  ;;  %v789_v24 = vmul.f32 1.442695, %v786_v22  ;;  %1279 = vmatpush3.bf16.msra.mxu1 %v1278_v59  ;;  %v1269_v63 = vpack.c.bf16 %v878_v62, %v877_v61  ;;  %v1272_v2 = vpack.c.bf16 %v880_v1, %v879_v0  ;;  %v743_v15 = vld [vmem:[#allocation3] sm:$0xff]  ;;  %v744_v22 = vld [vmem:[#allocation3 + $0x8] sm:$0xff] }
 0x2e3   : > { %v676_v20 = vmul.f32 1.442695, %v674_v16  ;;  %v678_v21 = vmul.f32 1.442695, %v675_v17 }
 0x2e4   : > { %1270 = vmatpush3.bf16.msra.mxu0 %v1269_v63  ;;  %v1206_v63 = vld [vmem:[%s2064_s7] ss:$0 sm:$0xff] }
 0x2e5   : > { %1403 = vpow2.f32 %v676_v20  ;;  %1271 = vmatprep.subr.bf16.mxu0 %v1668_v56 }
 0x2e6   : > { %1405 = vpow2.f32 %v678_v21 }
 0x2e7   : > { %1407 = vpow2.f32 %v787_v23 }
 0x2e8   : > { %1409 = vpow2.f32 %v789_v24  ;;  %1273 = vmatpush3.bf16.msra.mxu0 %v1272_v2 }
 0x2ef   : > { %v1404_v25 = vpop.eup %1403 }
 0x2f0   : > { %v1406_v26 = vpop.eup %1405  ;;  %683 = vperm.xlu0 %1393, %v1404_v25  }
 0x2f1   : > { %686 = vperm.xlu1 %1394, %v1406_v26   ;;  %v1408_v27 = vpop.eup %1407 }
 0x2f2   : > { %v1410_v28 = vpop.eup %1409 }
 0x2f5   : > { %794 = vperm.xlu1 %1394, %v1408_v27  }
 0x2f9   : > { %797 = vperm.xlu1 %1394, %v1410_v28  }
 0x36f   : > { %v684_v29 = vpop.permute.xlu0 %683 }
 0x370   : > { %v687_v30 = vpop.permute.xlu1 %686  ;;  %v691_v31 = vrot.slane %v684_v29, %v650_v60 }
 0x371   : > { %v695_v32 = vrot.slane %v687_v30, %v650_v60 }
 0x373   : > { %v696_v33 = vsel %vm656_vm3, %v695_v32, %v691_v31 }
 0x374   : > { %v795_v34 = vpop.permute.xlu1 %794  ;;  %v698_v35 = vsel %vm659_vm4, %v696_v33, 0.0 }
 0x375   : > { %699 = vadd.xlane.f32.xlu1 %v698_v35  ;;  %v802_v37 = vrot.slane %v795_v34, %v650_v60 }
 0x378   : > { %v798_v36 = vpop.permute.xlu1 %797 }
 0x379   : > { %v806_v38 = vrot.slane %v798_v36, %v650_v60  ;;  %v1670_v60 = vmov 0.0  }
 0x37a   : > { %1265 = vmatprep.mubr.msk.f32.mxu1 %vm1669_vm5, %v1670_v60  ;;  %1254 = vmatprep.mubr.msk.f32.mxu0 %vm1669_vm5, %v1670_v60 }
 0x37b   : > { %v807_v39 = vsel %vm656_vm3, %v806_v38, %v802_v37 }
 0x37c   : > { %v809_v40 = vsel %vm659_vm4, %v807_v39, 0.0 }
 0x37d   : > { %810 = vadd.xlane.f32.xlu0 %v809_v40 }
 0x402   : > { %v700_v41 = vpop.xlane.xlu1 %699 }
 0x403   : > { %1411 = vrcp.f32 %v700_v41 }
 0x40a   : > { %v811_v42 = vpop.xlane.xlu0 %810 }
 0x40b   : > { %1413 = vrcp.f32 %v811_v42 }
 0x40d   : > { %v1412_v43 = vpop.eup %1411 }
 0x40e   : > { %v710_v44 = vrot.slane %v1412_v43, %v670_v10  ;;  %v706_v45 = vrot.slane %v1412_v43, %v666_v9 }
 0x410   : > { %v714_v46 = vmul.f32 %v1406_v26, %v710_v44  ;;  %v713_v47 = vmul.f32 %v1404_v25, %v706_v45 }
 0x412   : > { %722 = vperm.xlu0 %1393, %v714_v46   ;;  %717 = vperm.xlu1 %1394, %v713_v47  }
 0x415   : > { %v1414_v48 = vpop.eup %1413 }
 0x416   : > { %v817_v49 = vrot.slane %v1414_v48, %v666_v9  ;;  %v821_v51 = vrot.slane %v1414_v48, %v670_v10 }
 0x418   : > { %v824_v50 = vmul.f32 %v1408_v27, %v817_v49  ;;  %v825_v55 = vmul.f32 %v1410_v28, %v821_v51 }
 0x41a   : > { %828 = vperm.xlu1 %1394, %v824_v50  }
 0x41e   : > { %833 = vperm.xlu1 %1394, %v825_v55  }
 0x491   : > { %v718_v5 = vpop.permute.xlu1 %717  ;;  %v723_v6 = vpop.permute.xlu0 %722 }
 0x492   : > { %v725_v7 = vmul.f32 %v718_v5, %v616_v3  ;;  %v726_v8 = vmul.f32 %v723_v6, %v617_v4  ;;  %v1207_v4 = vld [vmem:[%s2100_s22] ss:$0 sm:$0xff] }
 0x494   : > { %v727_v9 = vsel %vm477_vm2, %v725_v7, 0.0  ;;  %v734_v10 = vsel %vm477_vm2, %v726_v8, 0.0 }
 0x495   : > { %v728_v11 = vrot.slane %v727_v9, 4  ;;  %v735_v12 = vrot.slane %v734_v10, 4 }
 0x497   : > { %v729_v13 = vadd.f32 %v728_v11, %v727_v9  ;;  %v736_v14 = vadd.f32 %v735_v12, %v734_v10 }
 0x499   : > { %v730_v16 = vrot.slane %v729_v13, 2  ;;  %v737_v17 = vrot.slane %v736_v14, 2  ;;  %v829_v18 = vpop.permute.xlu1 %828 }
 0x49a   : > { %v836_v19 = vmul.f32 %v829_v18, %v743_v15 }
 0x49b   : > { %v731_v20 = vadd.f32 %v730_v16, %v729_v13  ;;  %v738_v21 = vadd.f32 %v737_v17, %v736_v14 }
 0x49c   : > { %v838_v23 = vsel %vm477_vm2, %v836_v19, 0.0 }
 0x49d   : > { %v732_v24 = vrot.slane %v731_v20, 1  ;;  %v739_v25 = vrot.slane %v738_v21, 1  ;;  %v839_v26 = vrot.slane %v838_v23, 4  ;;  %v834_v27 = vpop.permute.xlu1 %833 }
 0x49e   : > { %v837_v28 = vmul.f32 %v834_v27, %v744_v22 }
 0x49f   : > { %v733_v29 = vadd.f32 %v732_v24, %v731_v20  ;;  %v740_v30 = vadd.f32 %v739_v25, %v738_v21  ;;  %v840_v31 = vadd.f32 %v839_v26, %v838_v23 }
 0x4a0   : > { %v845_v32 = vsel %vm477_vm2, %v837_v28, 0.0 }
 0x4a1   : > { %v841_v33 = vrot.slane %v840_v31, 2  ;;  %v846_v34 = vrot.slane %v845_v32, 4  ;;  %v741_v35 = vmul.f32 0.25, %v733_v29  ;;  %v742_v36 = vmul.f32 0.25, %v740_v30 }
 0x4a3   : > { %v842_v37 = vadd.f32 %v841_v33, %v840_v31  ;;  %v847_v38 = vadd.f32 %v846_v34, %v845_v32  ;;  %v958_v39 = vsel %vm656_vm3, %v742_v36, %v741_v35 }
 0x4a4   : > { %1266 = vmatmul.mubr.msk.f32.vlgmr.msra.gmra.mrb[0].mxu1 %vm477_vm2, %v958_v39 }
 0x4a5   : > { %v843_v40 = vrot.slane %v842_v37, 1  ;;  %v848_v41 = vrot.slane %v847_v38, 2 }
 0x4a7   : > { %v844_v42 = vadd.f32 %v843_v40, %v842_v37  ;;  %v849_v43 = vadd.f32 %v848_v41, %v847_v38 }
 0x4a9   : > { %v850_v44 = vrot.slane %v849_v43, 1  ;;  %v852_v45 = vmul.f32 0.25, %v844_v42 }
 0x4ab   : > { %v851_v46 = vadd.f32 %v850_v44, %v849_v43  ;;  %v854_v48 = vsub.f32 %v852_v45, %v741_v35 }
 0x4ad   : > { %v853_v47 = vmul.f32 0.25, %v851_v46  ;;  %v856_v51 = vmul.f32 %v854_v48, %v854_v48 }
 0x4af   : > { %v883_v49 = vsel %vm656_vm3, %v853_v47, %v852_v45  ;;  %v855_v50 = vsub.f32 %v853_v47, %v742_v36 }
 0x4b0   : > { %1255 = vmatmul.mubr.msk.f32.vlgmr.msra.gmra.mrb[0].mxu0 %vm477_vm2, %v883_v49 }
 0x4b1   : > { %v857_v52 = vmul.f32 %v855_v50, %v855_v50 }
 0x4b3   : > { %v860_v53 = vsel %vm656_vm3, %v857_v52, %v856_v51 }
 0x4b4   : > { %v863_v54 = vsel %vm862_vm6, %v860_v53, 0.0 }
 0x4b5   : > { %864 = vadd.xlane.f32.xlu1 %v863_v54 }
 0x542   : > { %v865_v55 = vpop.xlane.xlu1 %864 }
 0x543   : > { %1415 = vrsqrt.f32 %v865_v55  ;;  %vm868_vm7 = vcmp.eq.f32.partialorder %v865_v55, inf  ;;  %v871_v61 = vand.u32 2147483648, %v865_v55  ;;  %vm870_vm8 = vcmp.eq.f32.partialorder %v865_v55, 0.0 }
 0x54d   : > { %v1416_v56 = vpop.eup %1415 }
 0x54e   : > { %v867_v59 = vmul.f32 %v1416_v56, %v865_v55 }
 0x550   : > { %v869_v60 = vsel %vm868_vm7, %v865_v55, %v867_v59 }
 0x551   : > { %v872_v62 = vsel %vm870_vm8, %v871_v61, %v869_v60 }
 0x552   : > { %v1038_v2 = vmul.f32 %v1206_v63, %v872_v62 }
 0x577   : > { %v1027_v57 = vpop.f32.mrb[0].mxu1 }
 0x578   : > { %v1267_v58 = vpop.f32.mrb[1].mxu1 }
 0x583   : > { %v952_v0 = vpop.f32.mrb[0].mxu0 }
 0x584   : > { %v1028_v1 = vadd.f32 %v1027_v57, %v952_v0  ;;  %v1256_v3 = vpop.f32.mrb[1].mxu0 }
 0x586   : > { %v1039_v5 = vadd.f32 %v1038_v2, %v1028_v1 }
 0x588   : > { %v1047_v6 = vadd.f32 %v1207_v4, %v1039_v5 }
 0x58a   : > { %1048 = vst [vmem:[#allocation15] sm:$0x3] %v1047_v6 }
 0x58b PF: > { %p1324_p2 = scmp.eq.s32.totalorder %s1751_s15, 3  ;;  %s1671_s5 = smov [#allocation15]  }
 0x58c   : > { %s1058_s25 = sshll.u32 %s1671_s5, 4  ;;  %s1059_s25 = int_to_ptr.vmem [resolvable:$true] %s1058_s25 }
 0x58d   : > { %s1561_s27 = scalar_lea.vmem %s1059_s25, 32  ;;  %p1568_p1 = scmp.lt.s32.totalorder %s1059_s25, %s1059_s25 }
 0x58e   : > { %p1562_p3 = scmp.ne.s32.totalorder %s1059_s25, %s1561_s27  ;;  %p1569_p4 = scmp.lt.s32.totalorder %s1561_s27, %s1561_s27 }
 0x590   : > { %p1563_p0 = pnand %p1562_p3, %p1324_p2  ;;  %p1570_p12 = por %p1569_p4, %p1568_p1 }
 0x592   : > { %p1564_p6 = pneg %p1563_p0 }
 0x594   : > { %p1571_p9 = pnand %p1570_p12, %p1564_p6 }
 0x596   : > { %1574 = shalt.err (!%p1571_p9)
}
 0x597   : > { %s2101_s2 = sld [smem:[#allocation27_spill]] }
 0x59d   : > { %s1575_s28 = scalar_lea.hbm %s2101_s2, 32 }
 0x59e   : > { %p1576_p7 = scmp.ne.s32.totalorder %s2101_s2, %s1575_s28  ;;  %p1581_p10 = scmp.lt.u32.totalorder %s1575_s28, %s2101_s2 }
 0x5a0   : > { %p1577_p5 = pnand %p1576_p7, %p1324_p2 }
 0x5a2   : > { %p1578_p8 = pneg %p1577_p5 }
 0x5a4   : > { %p1583_p11 = pnand %p1581_p10, %p1578_p8 }
 0x5a6   : > { %1586 = shalt.err (!%p1583_p11)
}
 0x5a7   : > { %1297 = dma.vmem_to_hbm [thread:$0]  (%p1324_p2), %s1059_s25, 32, %s2101_s2, [#allocation8]  }
 0x5a8   : > { %1628 = dma.done.wait (%p1324_p2), [#allocation8], 32  }
 0x5a9   : > { %1630 = vsyncadd (%p1324_p2), [#allocation8], 4294967264 }
 0x5aa PF: > { %s27_s14 = sadd.s32 1, %s1653_s14   ;;  %s2102_s6 = sld [smem:[#allocation21_spill]] }
 0x5ab   : > { %p24_p13 = scmp.ge.s32.totalorder %s27_s14, 6   ;;  %s2103_s30 = smov %s1637_s10 }
 0x5ac   : > { %s2104_s10 = smov %s1641_s11  ;;  %s2105_s11 = smov %s1860_s29 }
 0x5ad   : > { %s2106_s12 = smov %s1649_s13  ;;  %26 = sbr.rel (!%p24_p13) target bundleno = 15 (0xf), region = 127 }
 0x5b0   : > { %s2107_s13 = smov %s2102_s6 }
 0x5b4   :  { %1071 = vsyncpa [#allocation7], 1 }
 0x5b5   :  { %1073 = vsyncpa [#allocation7 + $0x1], 1 }
 0x5b6   :  { %1074 = vsyncpa [#allocation10], 1 }
 0x5b7   :  { %1076 = vsyncpa [#allocation10 + $0x1], 1 }
 0x5b8   :  { %1077 = vsyncpa [#allocation13], 1 }
 0x5b9   :  { %1078 = vsyncpa [#allocation8], 1 }
 0x5ba   :  { %1080 = vsyncpa [#allocation8 + $0x1], 1 }

</bundles_post_ra>
